<compile_context>
chip_gen: v5e
topology: v5e:2x2
jax: 0.10.0
libtpu: 0.0.40
codegen_flags: <defaults>
</compile_context>

<pallas_src>
import functools

import jax
import jax.numpy as jnp
from jax.experimental import pallas as pl
from jax.experimental.pallas import tpu as pltpu

_LANE = 128
_SUBLANE = 8
_NEG_INF = -1e30


def _round_up(x, m):
    return ((x + m - 1) // m) * m


def policy_net_kernel(x_ref, w1_ref, b1_ref, w2_ref, b2_ref, out_ref):
    """Fused MLP + softmax on one (TB, *) batch tile. All operands VMEM-resident."""
    # Hidden layer: Linear + ReLU. MXU matmul with f32 accumulation.
    h = jnp.dot(x_ref[...], w1_ref[...], preferred_element_type=jnp.float32)
    h = jnp.maximum(h + b1_ref[...], 0.0)                      # (TB, Hp) f32

    # Output layer. Cast h to the weight dtype only at the MXU operand (no-op for f32),
    # so elementwise math stays f32 even when bf16 weights are used.
    logits = jnp.dot(h.astype(w2_ref.dtype), w2_ref[...],
                     preferred_element_type=jnp.float32)
    logits = logits + b2_ref[...]                              # (TB, Ap) f32
    # Padded action lanes carry a -1e30 bias -> exp underflows to exactly 0 below.

    # Numerically-stable softmax over the action (lane) axis == torch dim=1.
    m = jnp.max(logits, axis=-1, keepdims=True)
    e = jnp.exp(logits - m)
    denom = jnp.sum(e, axis=-1, keepdims=True)
    # Exact f32 division: rows sum to 1 to f32 rounding (approx reciprocal was too lossy).
    out_ref[...] = e / denom


@functools.partial(jax.jit, static_argnames=("block_batch", "use_bf16"))
def policy_network_forward(x, w1, b1, w2, b2, *, block_batch=512, use_bf16=False):
    """
    x : (B, state_size) float32
    w1: (state_size, hidden)      (transposed vs. torch's (hidden, state_size))
    b1: (hidden,)
    w2: (hidden, action_size)
    b2: (action_size,)
    returns (B, action_size) softmax probabilities, float32.
    """
    B, S = x.shape
    H = w1.shape[1]
    A = w2.shape[1]

    # --- Lane-dense padding: hidden -> Hp, action -> Ap (multiples of 128). ---
    Hp = _round_up(H, _LANE)
    Ap = _round_up(A, _LANE)

    w1p = jnp.pad(w1.astype(jnp.float32), ((0, 0), (0, Hp - H)))
    b1p = jnp.pad(b1.astype(jnp.float32), (0, Hp - H)).reshape(1, Hp)
    w2p = jnp.pad(w2.astype(jnp.float32), ((0, Hp - H), (0, Ap - A)))
    # Padded action lanes get a -1e30 bias so they vanish under softmax.
    b2p = jnp.pad(b2.astype(jnp.float32), (0, Ap - A),
                  constant_values=_NEG_INF).reshape(1, Ap)

    xf = x.astype(jnp.float32)
    if use_bf16:  # halve HBM bytes of the dominant x stream / MXU operands
        xf = xf.astype(jnp.bfloat16)
        w1p = w1p.astype(jnp.bfloat16)
        w2p = w2p.astype(jnp.bfloat16)

    # --- Batch tiling: pad B to the tile size, grid over batch. ---
    B_al = _round_up(B, _SUBLANE)
    TB = B_al if B_al <= block_batch else block_batch
    B_pad = _round_up(B_al, TB)
    if B_pad != B:
        xf = jnp.pad(xf, ((0, B_pad - B), (0, 0)))
    grid = (B_pad // TB,)

    out_padded = pl.pallas_call(
        policy_net_kernel,
        out_shape=jax.ShapeDtypeStruct((B_pad, Ap), jnp.float32),
        grid=grid,
        in_specs=[
            pl.BlockSpec((TB, S), lambda i: (i, 0)),    # x streams along batch
            pl.BlockSpec((S, Hp), lambda i: (0, 0)),    # weights/biases stay resident
            pl.BlockSpec((1, Hp), lambda i: (0, 0)),
            pl.BlockSpec((Hp, Ap), lambda i: (0, 0)),
            pl.BlockSpec((1, Ap), lambda i: (0, 0)),
        ],
        out_specs=pl.BlockSpec((TB, Ap), lambda i: (i, 0)),     # lane-dense output tile
        compiler_params=pltpu.CompilerParams(
            dimension_semantics=("parallel",)),         # shards batch across v7x TCs
    )(xf, w1p, b1p, w2p, b2p)

    return out_padded[:B, :A]


def xavier_uniform(key, fan_in, fan_out):
    """Matches torch.nn.init.xavier_uniform_ bound; returns (fan_in, fan_out)."""
    limit = jnp.sqrt(6.0 / (fan_in + fan_out))
    return jax.random.uniform(
        key, (fan_in, fan_out), dtype=jnp.float32, minval=-limit, maxval=limit
    )


if __name__ == "__main__":
    # Small shapes implied by the PyTorch defaults (hidden_sizes=[64]).
    batch = 8
    state_size = 8
    hidden_size = 64
    action_size = 4

    key = jax.random.PRNGKey(0)
    k_x, k_w1, k_w2 = jax.random.split(key, 3)

    # Deterministic synthetic parameters (Xavier-uniform weights, biases = 0.01,
    # mirroring PolicyNetwork.initalize_weights_biases).
    x = jax.random.normal(k_x, (batch, state_size), dtype=jnp.float32)
    w1 = xavier_uniform(k_w1, state_size, hidden_size)   # (in, out) layout
    b1 = jnp.full((hidden_size,), 0.01, dtype=jnp.float32)
    w2 = xavier_uniform(k_w2, hidden_size, action_size)
    b2 = jnp.full((action_size,), 0.01, dtype=jnp.float32)

    out = policy_network_forward(x, w1, b1, w2, b2)
    out = jax.block_until_ready(out)

    # Cross-check against a pure-JAX reference of the same math.
    ref_h = jnp.maximum(x @ w1 + b1, 0.0)
    ref = jax.nn.softmax(ref_h @ w2 + b2, axis=1)
    assert out.shape == (batch, action_size)
    # Elementwise tolerance leaves headroom for MXU matmul precision on real hardware.
    assert jnp.allclose(out, ref, atol=2e-3, rtol=2e-3)
    # Exact softmax normalization -> rows sum to 1 up to f32 rounding.
    assert jnp.allclose(jnp.sum(out, axis=1), 1.0, atol=1e-5)

    print("KERNEL_OK")
</pallas_src>

<mosaic_0001>
module attributes {stable_mosaic.version = 11 : i64} {
  func.func @policy_net_kernel(%arg0: i32, %arg1: memref<8x8xf32, #tpu.memory_space<vmem>>, %arg2: memref<8x128xf32, #tpu.memory_space<vmem>>, %arg3: memref<1x128xf32, #tpu.memory_space<vmem>>, %arg4: memref<128x128xf32, #tpu.memory_space<vmem>>, %arg5: memref<1x128xf32, #tpu.memory_space<vmem>>, %arg6: memref<8x128xf32, #tpu.memory_space<vmem>>) attributes {dimension_semantics = [#tpu.dimension_semantics<parallel>], iteration_bounds = array<i64: 1>, scalar_prefetch = 0 : i64, scratch_operands = 0 : i64, tpu.core_type = #tpu.core_type<tc>, window_params = [{transform_indices = @transform_0, window_bounds = array<i64: 8, 8>}, {pipeline_mode = #tpu.pipeline_mode<synchronous>, transform_indices = @transform_1, window_bounds = array<i64: 8, 128>}, {pipeline_mode = #tpu.pipeline_mode<synchronous>, transform_indices = @transform_2, window_bounds = array<i64: 1, 128>}, {pipeline_mode = #tpu.pipeline_mode<synchronous>, transform_indices = @transform_3, window_bounds = array<i64: 128, 128>}, {pipeline_mode = #tpu.pipeline_mode<synchronous>, transform_indices = @transform_4, window_bounds = array<i64: 1, 128>}, {transform_indices = @transform_5, window_bounds = array<i64: 8, 128>}]} {
    %c0 = arith.constant 0 : index
    %c0_0 = arith.constant 0 : index
    %0 = vector.load %arg1[%c0, %c0_0] : memref<8x8xf32, #tpu.memory_space<vmem>>, vector<8x8xf32>
    %c0_1 = arith.constant 0 : index
    %c0_2 = arith.constant 0 : index
    %1 = vector.load %arg2[%c0_1, %c0_2] : memref<8x128xf32, #tpu.memory_space<vmem>>, vector<8x128xf32>
    %cst = arith.constant dense<0.000000e+00> : vector<8x128xf32>
    %2 = tpu.matmul %0, %1, %cst {dimension_numbers = #tpu.dot_dimension_numbers<[1], [0], [0], [1], [0, 0, 1, 1], [], []>} : vector<8x8xf32>, vector<8x128xf32>, vector<8x128xf32> -> vector<8x128xf32>
    %c0_3 = arith.constant 0 : index
    %c0_4 = arith.constant 0 : index
    %3 = vector.load %arg3[%c0_3, %c0_4] : memref<1x128xf32, #tpu.memory_space<vmem>>, vector<1x128xf32>
    %4 = vector.broadcast %3 : vector<1x128xf32> to vector<8x128xf32>
    %5 = arith.addf %2, %4 : vector<8x128xf32>
    %cst_5 = arith.constant 0.000000e+00 : f32
    %6 = vector.broadcast %cst_5 : f32 to vector<8x128xf32>
    %7 = arith.maximumf %5, %6 : vector<8x128xf32>
    %c0_6 = arith.constant 0 : index
    %c0_7 = arith.constant 0 : index
    %8 = vector.load %arg4[%c0_6, %c0_7] : memref<128x128xf32, #tpu.memory_space<vmem>>, vector<128x128xf32>
    %cst_8 = arith.constant dense<0.000000e+00> : vector<8x128xf32>
    %9 = tpu.matmul %7, %8, %cst_8 {dimension_numbers = #tpu.dot_dimension_numbers<[1], [0], [0], [1], [0, 0, 1, 1], [], []>} : vector<8x128xf32>, vector<128x128xf32>, vector<8x128xf32> -> vector<8x128xf32>
    %c0_9 = arith.constant 0 : index
    %c0_10 = arith.constant 0 : index
    %10 = vector.load %arg5[%c0_9, %c0_10] : memref<1x128xf32, #tpu.memory_space<vmem>>, vector<1x128xf32>
    %11 = vector.broadcast %10 : vector<1x128xf32> to vector<8x128xf32>
    %12 = arith.addf %9, %11 : vector<8x128xf32>
    %cst_11 = arith.constant dense<0xFF800000> : vector<8xf32>
    %13 = vector.multi_reduction <maximumf>, %12, %cst_11 [1] : vector<8x128xf32> to vector<8xf32>
    %14 = vector.shape_cast %13 : vector<8xf32> to vector<8x1xf32>
    %15 = vector.broadcast %14 : vector<8x1xf32> to vector<8x128xf32>
    %16 = arith.subf %12, %15 : vector<8x128xf32>
    %17 = math.exp %16 : vector<8x128xf32>
    %cst_12 = arith.constant dense<0.000000e+00> : vector<8xf32>
    %18 = vector.multi_reduction <add>, %17, %cst_12 [1] : vector<8x128xf32> to vector<8xf32>
    %19 = vector.shape_cast %18 : vector<8xf32> to vector<8x1xf32>
    %20 = vector.broadcast %19 : vector<8x1xf32> to vector<8x128xf32>
    %21 = arith.divf %17, %20 : vector<8x128xf32>
    %c0_13 = arith.constant 0 : index
    %c0_14 = arith.constant 0 : index
    %22 = vector.load %arg6[%c0_13, %c0_14] : memref<8x128xf32, #tpu.memory_space<vmem>>, vector<8x128xf32>
    tpu.vector_store %arg6[%c0_13, %c0_14], %21 {strides = array<i32>} : memref<8x128xf32, #tpu.memory_space<vmem>>, vector<8x128xf32>,
    return
  }
  func.func @transform_0(%arg0: i32) -> (i32, i32) {
    %c0_i32 = arith.constant 0 : i32
    %c0_i32_0 = arith.constant 0 : i32
    return %arg0, %c0_i32 : i32, i32
  }
  func.func @transform_1(%arg0: i32) -> (i32, i32) {
    %c0_i32 = arith.constant 0 : i32
    %c0_i32_0 = arith.constant 0 : i32
    %c0_i32_1 = arith.constant 0 : i32
    return %c0_i32, %c0_i32_0 : i32, i32
  }
  func.func @transform_2(%arg0: i32) -> (i32, i32) {
    %c0_i32 = arith.constant 0 : i32
    %c0_i32_0 = arith.constant 0 : i32
    %c0_i32_1 = arith.constant 0 : i32
    return %c0_i32, %c0_i32_0 : i32, i32
  }
  func.func @transform_3(%arg0: i32) -> (i32, i32) {
    %c0_i32 = arith.constant 0 : i32
    %c0_i32_0 = arith.constant 0 : i32
    %c0_i32_1 = arith.constant 0 : i32
    return %c0_i32, %c0_i32_0 : i32, i32
  }
  func.func @transform_4(%arg0: i32) -> (i32, i32) {
    %c0_i32 = arith.constant 0 : i32
    %c0_i32_0 = arith.constant 0 : i32
    %c0_i32_1 = arith.constant 0 : i32
    return %c0_i32, %c0_i32_0 : i32, i32
  }
  func.func @transform_5(%arg0: i32) -> (i32, i32) {
    %c0_i32 = arith.constant 0 : i32
    %c0_i32_0 = arith.constant 0 : i32
    return %arg0, %c0_i32 : i32, i32
  }
}

</mosaic_0001>

<bundles_post_ra>
// kernel: policy_network_forward.1
= control target key start
LH: loop header
LB: loop body
LE: loop exit
PB: predicated region body
PF: predicated region fallthrough
CT: control target
= control target key end

     0   :  { %vm26_vm0 = vcmask 64512   ;;  %s218_s1 = inlined_call_operand.vmem [shape: f32[8,128], index: 1, kind: input, shape index: {}]   ;;  %s219_s0 = inlined_call_operand.vmem [shape: f32[8,8], index: 0, kind: input, shape index: {}]   ;;  %s220_s3 = inlined_call_operand.vmem [shape: f32[128,128], index: 3, kind: input, shape index: {}]   ;;  %s221_s2 = inlined_call_operand.vmem [shape: f32[1,128], index: 2, kind: input, shape index: {}]   ;;  %s222_s4 = inlined_call_operand.vmem [shape: f32[1,128], index: 4, kind: input, shape index: {}]   ;;  %s223_s5 = inlined_call_operand.vmem [shape: f32[8,128], index: 5, kind: output, shape index: {}]  }
   0x1   :  { %v21_v0 = vld [vmem:[%s218_s1] sm:$0xff]  ;;  %v66_v2 = vld [vmem:[%s220_s3 + $0x78] sm:$0xff]  ;;  %v65_v3 = vld [vmem:[%s220_s3 + $0x70] sm:$0xff] }
   0x2   :  { %v20_v1 = vld [vmem:[%s219_s0] sm:$0xff]  ;;  %45 = vmatpush.msra.mxu0 %v21_v0  ;;  %71 = vmatpush.msra.mxu1 %v66_v2  ;;  %v64_v4 = vld [vmem:[%s220_s3 + $0x68] sm:$0xff]  ;;  %v62_v6 = vld [vmem:[%s220_s3 + $0x58] sm:$0xff] }
   0x3   :  { %118 = vmatmul.msk.f32.vlgmr.msra.gmra.mxu0 %vm26_vm0, %v20_v1  ;;  %v63_v5 = vld [vmem:[%s220_s3 + $0x60] sm:$0xff]  ;;  %v61_v7 = vld [vmem:[%s220_s3 + $0x50] sm:$0xff]  ;;  %v60_v8 = vld [vmem:[%s220_s3 + $0x48] sm:$0xff] }
   0x4   :  { %72 = vmatpush.msra.mxu1 %v65_v3  ;;  %v59_v9 = vld [vmem:[%s220_s3 + $0x40] sm:$0xff]  ;;  %v58_v10 = vld [vmem:[%s220_s3 + $0x38] sm:$0xff]  ;;  %v57_v11 = vld [vmem:[%s220_s3 + $0x30] sm:$0xff] }
   0x5   :  { %v56_v12 = vld [vmem:[%s220_s3 + $0x28] sm:$0xff]  ;;  %v55_v13 = vld [vmem:[%s220_s3 + $0x20] sm:$0xff]  ;;  %v54_v14 = vld [vmem:[%s220_s3 + $0x18] sm:$0xff] }
   0x6   :  { %73 = vmatpush.msra.mxu1 %v64_v4  ;;  %v53_v15 = vld [vmem:[%s220_s3 + $0x10] sm:$0xff]  ;;  %v52_v16 = vld [vmem:[%s220_s3 + $0x8] sm:$0xff]  ;;  %v51_v17 = vld [vmem:[%s220_s3] sm:$0xff] }
   0x7   :  { %v119_v18 = vld [vmem:[%s221_s2] ss:$0 sm:$0xff] }
   0x8   :  { %74 = vmatpush.msra.mxu1 %v63_v5  ;;  %v120_v22 = vld [vmem:[%s222_s4] ss:$0 sm:$0xff] }
   0xa   :  { %75 = vmatpush.msra.mxu1 %v62_v6 }
   0xc   :  { %76 = vmatpush.msra.mxu1 %v61_v7 }
   0xe   :  { %77 = vmatpush.msra.mxu1 %v60_v8 }
  0x10   :  { %78 = vmatpush.msra.mxu1 %v59_v9 }
  0x12   :  { %79 = vmatpush.msra.mxu1 %v58_v10 }
  0x14   :  { %80 = vmatpush.msra.mxu1 %v57_v11 }
  0x16   :  { %81 = vmatpush.msra.mxu1 %v56_v12 }
  0x18   :  { %82 = vmatpush.msra.mxu1 %v55_v13 }
  0x1a   :  { %83 = vmatpush.msra.mxu1 %v54_v14 }
  0x1c   :  { %84 = vmatpush.msra.mxu1 %v53_v15 }
  0x1e   :  { %85 = vmatpush.msra.mxu1 %v52_v16 }
  0x20   :  { %86 = vmatpush.msra.mxu1 %v51_v17 }
  0x80   :  { %v47_v19 = vpop.f32.mrf.mxu0 }
  0x81   :  { %v48_v20 = vadd.f32 %v119_v18, %v47_v19 }
  0x83   :  { %v50_v21 = vmax.f32 %v48_v20, 0.0 }
  0x85   :  { %87 = vmatmul.f32.vlgmr.msra.gmra.mxu1 %v50_v21 }
 0x102   :  { %v88_v23 = vpop.f32.mrf.mxu1 }
 0x103   :  { %v89_v24 = vadd.f32 %v120_v22, %v88_v23 }
 0x105   :  { %91 = vmax.xlane.f32.xlu0 %v89_v24 }
 0x178   :  { %v92_v25 = vpop.xlane.xlu0 %91 }
 0x179   :  { %v93_v26 = vsub.f32 %v89_v24, %v92_v25 }
 0x17b   :  { %v94_v27 = vmul.f32 1.442695, %v93_v26 }
 0x17d   :  { %121 = vpow2.f32 %v94_v27 }
 0x183   :  { %v122_v28 = vpop.eup %121 }
 0x184   :  { %96 = vadd.xlane.f32.xlu0 %v122_v28 }
 0x1f7   :  { %v97_v29 = vpop.xlane.xlu0 %96 }
 0x1f8   :  { %123 = vrcp.f32 %v97_v29  ;;  %v109_v33 = vand.u32 2147483648, %v97_v29  ;;  %v107_v35 = vand.u32 2147483647, %v97_v29  ;;  %vm103_vm2 = vweird.f32 %v97_v29 }
 0x1fa   :  { %v110_v37 = vor.u32 1.1754944e-38, %v109_v33  ;;  %vm108_vm4 = vcmp.eq.f32.partialorder %v107_v35, 8.507059e+37 }
 0x1fe   :  { %v124_v30 = vpop.eup %123 }
 0x1ff   :  { %v99_v31 = vmul.f32 %v124_v30, %v97_v29  ;;  %vm104_vm1 = vweird.f32 %v124_v30 }
 0x200   :  { %vm105_vm3 = vmor %vm103_vm2, %vm104_vm1 }
 0x201   :  { %v100_v32 = vsub.f32 1.0, %v99_v31 }
 0x203   :  { %v101_v34 = vmul.f32 %v124_v30, %v100_v32 }
 0x205   :  { %v102_v36 = vadd.f32 %v124_v30, %v101_v34 }
 0x207   :  { %v106_v38 = vsel %vm105_vm3, %v124_v30, %v102_v36 }
 0x208   :  { %v111_v39 = vsel %vm108_vm4, %v110_v37, %v106_v38 }
 0x209   :  { %v112_v40 = vmul.f32 %v122_v28, %v111_v39 }
 0x20b   :  { %113 = vst [vmem:[%s223_s5] sm:$0xff] %v112_v40 }

</bundles_post_ra>
